<compile_context>
chip_gen: v5e
topology: v5e:2x2
jax: 0.10.0
libtpu: 0.0.40
codegen_flags: <defaults>
</compile_context>

<pallas_src>
import jax
import jax.numpy as jnp
from jax.experimental import pallas as pl
from jax.experimental.pallas import tpu as pltpu

_LANES = 128


def _round_up(a, b):
    return ((a + b - 1) // b) * b


def _vmem_budget_bytes():
    """~3/4 of physical VMEM (48 MiB on v7x, 96 MiB on v5e/v6e)."""
    try:
        cap = pltpu.get_tpu_info().vmem_capacity_bytes
    except Exception:
        cap = 64 * 1024 * 1024  # conservative (v7x) fallback
    return (cap * 3) // 4


def _make_kernel(fn):
    def kernel(g_ref, x_ref, o_ref):
        # g lives in SMEM (scalar prefetch); read once per tile.
        g = g_ref[0]                              # f32 scalar
        y = fn(x_ref[...])                        # fn in the input dtype
        # Gate multiply in f32 (free: kernel is DMA-bound), downcast at store.
        o_ref[...] = (y.astype(jnp.float32) * g).astype(o_ref.dtype)

    return kernel


def _pick_tile_rows(rows, lane_width, itemsize, tile_bytes, sub_mult):
    if rows <= sub_mult:
        # Single partially-filled block: "block == full array" layout exception.
        return rows
    tile_rows = max(sub_mult, tile_bytes // (lane_width * itemsize))
    tile_rows = max(sub_mult, (tile_rows // sub_mult) * sub_mult)
    # Keep >= ~4 grid steps so both v7x TensorCores get work and the
    # pipeline has steps to overlap DMA behind.
    cap = max(sub_mult, _round_up(pl.cdiv(rows, 4), sub_mult))
    tile_rows = min(tile_rows, cap)
    if tile_rows >= rows:
        tile_rows = rows
    return tile_rows


def _run_tiled(x2, g_arr, fn, tile_rows, vmem_limit):
    rows, lane_width = x2.shape
    itemsize = jnp.dtype(x2.dtype).itemsize
    n = x2.size
    grid = (pl.cdiv(rows, tile_rows),)

    return pl.pallas_call(
        _make_kernel(fn),
        out_shape=jax.ShapeDtypeStruct((rows, lane_width), x2.dtype),
        grid_spec=pltpu.PrefetchScalarGridSpec(
            num_scalar_prefetch=1,  # g -> SMEM, passed first to kernel/index_maps
            grid=grid,
            in_specs=[
                pl.BlockSpec((tile_rows, lane_width), lambda r, g: (r, 0)),
            ],
            out_specs=pl.BlockSpec((tile_rows, lane_width), lambda r, g: (r, 0)),
        ),
        compiler_params=pltpu.CompilerParams(
            dimension_semantics=("parallel",),
            vmem_limit_bytes=int(vmem_limit),
        ),
        cost_estimate=pl.CostEstimate(
            flops=n, transcendentals=0, bytes_accessed=2 * n * itemsize
        ),
    )(g_arr, x2)


def rezero(x, g, fn=lambda t: t, tile_bytes=None, min_kernel_bytes=1 << 20):
    """out = fn(x) * g, computed in a single Pallas TPU kernel.

    x : arbitrary-shaped array (e.g. (B, S, D))
    g : scalar ReZero gate (torch init = 0.001)
    fn: strictly-elementwise, shape/dtype-preserving JAX function.
    """
    g_f32 = jnp.asarray(g, dtype=jnp.float32)
    n = x.size
    if n == 0:
        return x

    itemsize = jnp.dtype(x.dtype).itemsize
    total_bytes = n * itemsize

    # Tiny inputs: kernel dispatch dominates -- plain JAX is strictly faster.
    if total_bytes < min_kernel_bytes:
        return (fn(x).astype(jnp.float32) * g_f32).astype(x.dtype)

    vmem_limit = _vmem_budget_bytes()
    if tile_bytes is None:
        # 2 input + 2 output buffers per tile stay under ~half the scoped budget:
        # ~6 MiB on v7x (64 MiB VMEM), ~12 MiB on v5e/v6e (128 MiB VMEM).
        tile_bytes = max(2 * 1024 * 1024, min(12 * 1024 * 1024, vmem_limit // 8))

    # Packed-sublane multiple: 8 for 4-byte, 16 for 2-byte, 32 for 1-byte dtypes.
    sub_mult = 8 * (4 // itemsize)

    g_arr = g_f32.reshape((1,))
    orig_shape = x.shape
    last = orig_shape[-1] if x.ndim >= 1 else 1

    natural_ok = (
        x.ndim >= 2
        and last % _LANES == 0
        and sub_mult * last * itemsize <= tile_bytes  # min block fits tile budget
    )

    if natural_ok:
        # --- zero-copy natural layout: (prod(leading), D) ------------------
        rows = n // last
        x2 = x.reshape(rows, last)
        tile_rows = _pick_tile_rows(rows, last, itemsize, tile_bytes, sub_mult)
        out2 = _run_tiled(x2, g_arr, fn, tile_rows, vmem_limit)
        return out2.reshape(orig_shape)

    # --- lane-dense fallback: flatten to (rows, 128) ------------------------
    flat = x.reshape(-1)
    padded_n = _round_up(n, _LANES)          # pad only to the next 128 lanes
    if padded_n != n:
        # NOTE: padded zeros are pushed through fn; fine for elementwise fns
        # with finite fn(0).
        flat = jnp.pad(flat, (0, padded_n - n))
    rows = padded_n // _LANES
    x2 = flat.reshape(rows, _LANES)
    tile_rows = _pick_tile_rows(rows, _LANES, itemsize, tile_bytes, sub_mult)
    out2 = _run_tiled(x2, g_arr, fn, tile_rows, vmem_limit)

    out_flat = out2.reshape(-1)
    if padded_n != n:
        out_flat = out_flat[:n]
    return out_flat.reshape(orig_shape)


if __name__ == "__main__":
    key = jax.random.PRNGKey(0)

    # Deterministic parameter init, matching nn.Parameter(torch.tensor(0.001)).
    g = jnp.float32(0.001)
    fn = lambda t: t  # the ReZero module itself defines no fn compute

    # 1) Small shape from the module (batch=2, seq=8, hidden=32); force the
    #    Pallas path (min_kernel_bytes=0) so the kernel itself is exercised.
    x_small = jax.random.normal(key, (2, 8, 32), dtype=jnp.float32)
    out_small = jax.block_until_ready(rezero(x_small, g, fn=fn, min_kernel_bytes=0))
    ref_small = fn(x_small) * g
    assert out_small.shape == x_small.shape and out_small.dtype == x_small.dtype
    assert jnp.allclose(out_small, ref_small, atol=1e-6, rtol=1e-6)

    # 2) Lane-aligned hidden dim exercises the zero-copy natural-layout path
    #    with a multi-step grid (both TensorCores on v7x).
    x_nat = jax.random.normal(jax.random.PRNGKey(1), (2, 8, 128), dtype=jnp.float32)
    out_nat = jax.block_until_ready(rezero(x_nat, g, fn=fn, min_kernel_bytes=0))
    assert jnp.allclose(out_nat, fn(x_nat) * g, atol=1e-6, rtol=1e-6)

    # 3) Default call on a tiny tensor takes the plain-JAX fast path.
    out_fast = jax.block_until_ready(rezero(x_small, g, fn=fn))
    assert jnp.allclose(out_fast, ref_small, atol=1e-6, rtol=1e-6)

    print("KERNEL_OK")
</pallas_src>

<mosaic_0001>
module attributes {stable_mosaic.version = 11 : i64} {
  func.func @kernel(%arg0: i32, %arg1: memref<1xf32, #tpu.memory_space<smem>>, %arg2: memref<4x128xf32, #tpu.memory_space<vmem>>, %arg3: memref<4x128xf32, #tpu.memory_space<vmem>>) attributes {dimension_semantics = [#tpu.dimension_semantics<parallel>], iteration_bounds = array<i64: 1>, scalar_prefetch = 1 : i64, scratch_operands = 0 : i64, tpu.core_type = #tpu.core_type<tc>, window_params = [{transform_indices = @transform_0, window_bounds = array<i64: 4, 128>}, {transform_indices = @transform_1, window_bounds = array<i64: 4, 128>}]} {
    %c0 = arith.constant 0 : index
    %0 = memref.load %arg1[%c0] : memref<1xf32, #tpu.memory_space<smem>>
    %c0_0 = arith.constant 0 : index
    %c0_1 = arith.constant 0 : index
    %1 = vector.load %arg2[%c0_0, %c0_1] : memref<4x128xf32, #tpu.memory_space<vmem>>, vector<4x128xf32>
    %2 = vector.broadcast %0 : f32 to vector<4x128xf32>
    %3 = arith.mulf %1, %2 : vector<4x128xf32>
    %c0_2 = arith.constant 0 : index
    %c0_3 = arith.constant 0 : index
    %4 = vector.load %arg3[%c0_2, %c0_3] : memref<4x128xf32, #tpu.memory_space<vmem>>, vector<4x128xf32>
    tpu.vector_store %arg3[%c0_2, %c0_3], %3 {strides = array<i32>} : memref<4x128xf32, #tpu.memory_space<vmem>>, vector<4x128xf32>,
    return
  }
  func.func @transform_0(%arg0: i32, %arg1: memref<1xf32, #tpu.memory_space<smem>>) -> (i32, i32) {
    %c0_i32 = arith.constant 0 : i32
    %c0_i32_0 = arith.constant 0 : i32
    return %arg0, %c0_i32 : i32, i32
  }
  func.func @transform_1(%arg0: i32, %arg1: memref<1xf32, #tpu.memory_space<smem>>) -> (i32, i32) {
    %c0_i32 = arith.constant 0 : i32
    %c0_i32_0 = arith.constant 0 : i32
    return %arg0, %c0_i32 : i32, i32
  }
}

</mosaic_0001>

<bundles_post_ra>
// kernel: tpu_custom_call.1
= control target key start
LH: loop header
LB: loop body
LE: loop exit
PB: predicated region body
PF: predicated region fallthrough
CT: control target
= control target key end

     0   :  { %8 = vsyncpa [#allocation5], 0  ;;  %s127_s0 = inlined_call_operand.<no memory space> [shape: f32[1], index: 0, kind: input, shape index: {}]   ;;  %s128_s1 = inlined_call_operand.hbm [shape: f32[4,128], index: 1, kind: input, shape index: {}]   ;;  %s129_s2 = inlined_call_operand.hbm [shape: f32[4,128], index: 2, kind: output, shape index: {}]  }
   0x1   :  { %9 = vsyncpa [#allocation6], 0  ;;  %s15_s11 = sshll.u32 %s128_s1, 4  ;;  %s101_s12 = smov [#allocation4]   ;;  %s16_s11 = int_to_ptr.hbm [resolvable:$true] %s15_s11 }
   0x2   :  { %s17_s13 = sshll.u32 %s101_s12, 4  ;;  %s18_s13 = int_to_ptr.vmem [resolvable:$true] %s17_s13 }
   0x3   :  { %20 = dma.hbm_to_vmem [thread:$0]  %s16_s11, 64, %s18_s13, [#allocation5]  }
   0x4   :  { %97 = dma.done.wait [#allocation5], 64  }
   0x5   :  { %98 = vsyncadd [#allocation5], 4294967232  ;;  %v27_v0 = vstv %s127_s0  ;;  %s102_s16 = smov [#allocation7]   ;;  %s37_s20 = sshll.u32 %s129_s2, 4  ;;  %v26_v1 = vld [vmem:[#allocation4] sm:$0xf]  ;;  %s38_s20 = int_to_ptr.hbm [resolvable:$true] %s37_s20 }
   0x6   :  { %s35_s17 = sshll.u32 %s102_s16, 4  ;;  %v28_v2 = vmul.f32 %v27_v0, %v26_v1  ;;  %s36_s17 = int_to_ptr.vmem [resolvable:$true] %s35_s17 }
   0x8   :  { %29 = vst [vmem:[#allocation7] sm:$0xf] %v28_v2 }
   0x9   :  { %40 = dma.vmem_to_hbm [thread:$0]  %s36_s17, 64, %s38_s20, [#allocation6]  }
   0xa   :  { %99 = dma.done.wait [#allocation6], 64  }
   0xb   :  { %100 = vsyncadd [#allocation6], 4294967232 }
   0xc   :  { %45 = vsyncpa [#allocation5], 1 }
   0xd   :  { %46 = vsyncpa [#allocation6], 1 }

</bundles_post_ra>
